<compile_context>
chip_gen: v6e
topology: v6e:2x2x1
jax: 0.10.0
libtpu: 0.0.40
codegen_flags: <defaults>
</compile_context>

<pallas_src>
import jax
import jax.numpy as jnp
from jax.experimental import pallas as pl
from jax.experimental.pallas import tpu as pltpu


def _budgets():
    """(target_block_bytes, vmem_limit_bytes), gated on physical VMEM size."""
    vmem_phys = 64 * 1024 * 1024  # conservative default (v7x-sized)
    try:
        info = pltpu.get_tpu_info()
        vmem_phys = int(getattr(info, "vmem_capacity_bytes", vmem_phys))
    except Exception:
        pass
    if vmem_phys >= 100 * 1024 * 1024:            # v5e / v6e: 128 MiB physical
        return 8 * 1024 * 1024, 96 * 1024 * 1024
    return 4 * 1024 * 1024, 40 * 1024 * 1024      # v7x: 64 MiB physical


def _choose_blocks(rows, lanes, itemsize, target_bytes, scale_along_rows):
    """Pick (block_rows, block_lanes) under a per-buffer byte budget."""
    # Lane (last) axis: keep it a multiple of 128 whenever possible.
    max_lane = max(128, (target_bytes // (8 * itemsize)) // 128 * 128)
    if lanes % 128 == 0:
        block_lanes = min(lanes, max_lane)
    elif 8 * lanes * itemsize <= target_bytes:
        block_lanes = lanes                       # full extent (always legal)
    else:
        block_lanes = max_lane                    # ragged last lane block
    # Row (second-to-last) axis: multiple of 8, or full extent if rows < 8.
    if rows < 8:
        block_rows = rows
    else:
        # Account for the 128-lane padding of the (block_rows, 1) scale/bias
        # blocks (2 arrays x 128 lanes x 4 B = 1 KiB per row) when applicable.
        per_row = block_lanes * itemsize + (1024 if scale_along_rows else 0)
        max_rows = max(8, (target_bytes // per_row) // 8 * 8)
        block_rows = min(max_rows, (rows // 8) * 8)
    return block_rows, block_lanes


def _maybe_split_for_megacore(rows, lanes, itemsize, block_rows, block_lanes):
    """Guarantee >=2 grid blocks on mid/large inputs so v7x's 2 TCs get work."""
    if rows * lanes * itemsize < 512 * 1024:
        return block_rows, block_lanes            # tiny: one block is fine
    n_blocks = (-(-rows // block_rows)) * (-(-lanes // block_lanes))
    if n_blocks >= 2:
        return block_rows, block_lanes
    if block_lanes >= 256 and block_lanes % 256 == 0:
        return block_rows, block_lanes // 2
    if block_rows >= 16 and block_rows % 16 == 0:
        return block_rows // 2, block_lanes
    return block_rows, block_lanes


def _frozen_bn_kernel(x_ref, scale_ref, bias_ref, o_ref):
    # x_ref/o_ref: (block_rows, block_lanes); scale/bias broadcast against it
    # (either (block_rows, 1) or (1, block_lanes)).  Compute promotes to f32.
    o_ref[...] = (x_ref[...] * scale_ref[...] + bias_ref[...]).astype(o_ref.dtype)


def frozen_batch_norm_2d(x, weight, bias, running_mean, running_var, eps=1e-5):
    """FrozenBatchNorm2d forward.  x: (N, C, H, W)."""
    N, C, H, W = x.shape
    HW = H * W
    itemsize = x.dtype.itemsize
    f32 = jnp.float32

    # Tiny O(C) precompute in plain JAX (mirrors the PyTorch forward).
    scale_c = weight.astype(f32) * jax.lax.rsqrt(running_var.astype(f32) + eps)
    bias_c = bias.astype(f32) - running_mean.astype(f32) * scale_c

    target_bytes, vmem_limit = _budgets()

    scale_along_rows = (HW % 128 == 0)
    if scale_along_rows:
        # Layout A: one row per (n, c) pair, spatial axis on lanes (128-aligned).
        rows, lanes = N * C, HW
        x2d = x.reshape(rows, lanes)
        scale_arr = jnp.tile(scale_c, N).reshape(rows, 1)
        bias_arr = jnp.tile(bias_c, N).reshape(rows, 1)
    else:
        # Layout B: one row per batch element, lanes = C*H*W (lane-dense even
        # for small / non-128-aligned H*W like 7x7).
        rows, lanes = N, C * HW
        x2d = x.reshape(rows, lanes)
        scale_arr = jnp.repeat(scale_c, HW).reshape(1, lanes)
        bias_arr = jnp.repeat(bias_c, HW).reshape(1, lanes)

    block_rows, block_lanes = _choose_blocks(
        rows, lanes, itemsize, target_bytes, scale_along_rows)
    block_rows, block_lanes = _maybe_split_for_megacore(
        rows, lanes, itemsize, block_rows, block_lanes)

    n_row_blocks = pl.cdiv(rows, block_rows)
    n_lane_blocks = pl.cdiv(lanes, block_lanes)

    if scale_along_rows:
        # Lane axis innermost: the (block_rows, 1) scale/bias block index is
        # constant across it, so those blocks stay VMEM-resident.
        grid = (n_row_blocks, n_lane_blocks)
        x_spec = pl.BlockSpec((block_rows, block_lanes), lambda i, j: (i, j))
        sb_spec = pl.BlockSpec((block_rows, 1), lambda i, j: (i, 0))
    else:
        # Row axis innermost: the (1, block_lanes) scale/bias block index is
        # constant across it, so those blocks stay VMEM-resident.
        grid = (n_lane_blocks, n_row_blocks)
        x_spec = pl.BlockSpec((block_rows, block_lanes), lambda j, i: (i, j))
        sb_spec = pl.BlockSpec((1, block_lanes), lambda j, i: (0, j))
    out_spec = x_spec

    out2d = pl.pallas_call(
        _frozen_bn_kernel,
        out_shape=jax.ShapeDtypeStruct((rows, lanes), x.dtype),
        grid_spec=pltpu.PrefetchScalarGridSpec(
            num_scalar_prefetch=0,
            grid=grid,
            in_specs=[x_spec, sb_spec, sb_spec],
            out_specs=out_spec,
        ),
        compiler_params=pltpu.CompilerParams(
            dimension_semantics=("parallel", "parallel"),
            vmem_limit_bytes=vmem_limit,
        ),
        cost_estimate=pl.CostEstimate(
            flops=2 * rows * lanes,
            transcendentals=0,
            bytes_accessed=2 * rows * lanes * itemsize + 2 * scale_arr.size * 4,
        ),
    )(x2d, scale_arr, bias_arr)

    return out2d.reshape(N, C, H, W)


def _reference(x, weight, bias, running_mean, running_var, eps=1e-5):
    C = x.shape[1]
    scale = (weight * jax.lax.rsqrt(running_var + eps)).reshape(1, C, 1, 1)
    b = bias.reshape(1, C, 1, 1) - running_mean.reshape(1, C, 1, 1) * scale
    return x * scale + b


if __name__ == "__main__":
    key = jax.random.PRNGKey(0)

    # Primary check: (2, 4, 16, 16) -> HW = 256 (128-aligned) -> layout A.
    N, C, H, W = 2, 4, 16, 16
    kx, kw, kb, km, kv = jax.random.split(key, 5)
    x = jax.random.normal(kx, (N, C, H, W), dtype=jnp.float32)
    weight = jnp.ones((C,), jnp.float32) + 0.1 * jax.random.normal(kw, (C,))
    bias = jnp.zeros((C,), jnp.float32) + 0.1 * jax.random.normal(kb, (C,))
    running_mean = 0.5 * jax.random.normal(km, (C,), dtype=jnp.float32)
    running_var = jnp.abs(jax.random.normal(kv, (C,), dtype=jnp.float32)) + 0.5

    out = jax.block_until_ready(
        frozen_batch_norm_2d(x, weight, bias, running_mean, running_var))
    ref = _reference(x, weight, bias, running_mean, running_var)
    assert out.shape == (N, C, H, W)
    assert out.dtype == x.dtype
    assert jnp.allclose(out, ref, atol=1e-5, rtol=1e-5)

    # Secondary check: (2, 3, 7, 7) -> ragged rows, non-128-aligned HW ->
    # layout B (lanes = C*H*W), no wrapper padding anywhere.
    N2, C2, H2, W2 = 2, 3, 7, 7
    k2 = jax.random.split(key, 2)[1]
    kx2, kw2, kb2, km2, kv2 = jax.random.split(k2, 5)
    x2 = jax.random.normal(kx2, (N2, C2, H2, W2), dtype=jnp.float32)
    w2 = jnp.ones((C2,), jnp.float32) + 0.1 * jax.random.normal(kw2, (C2,))
    b2 = jnp.zeros((C2,), jnp.float32) + 0.1 * jax.random.normal(kb2, (C2,))
    rm2 = 0.5 * jax.random.normal(km2, (C2,), dtype=jnp.float32)
    rv2 = jnp.abs(jax.random.normal(kv2, (C2,), dtype=jnp.float32)) + 0.5

    out2 = jax.block_until_ready(frozen_batch_norm_2d(x2, w2, b2, rm2, rv2))
    ref2 = _reference(x2, w2, b2, rm2, rv2)
    assert out2.shape == (N2, C2, H2, W2)
    assert out2.dtype == x2.dtype
    assert jnp.allclose(out2, ref2, atol=1e-5, rtol=1e-5)

    print("KERNEL_OK")
</pallas_src>

<mosaic_0001>
module attributes {stable_mosaic.version = 11 : i64} {
  func.func @_frozen_bn_kernel(%arg0: i32, %arg1: i32, %arg2: memref<8x256xf32, #tpu.memory_space<vmem>>, %arg3: memref<8x1xf32, #tpu.memory_space<vmem>>, %arg4: memref<8x1xf32, #tpu.memory_space<vmem>>, %arg5: memref<8x256xf32, #tpu.memory_space<vmem>>) attributes {dimension_semantics = [#tpu.dimension_semantics<parallel>, #tpu.dimension_semantics<parallel>], iteration_bounds = array<i64: 1, 1>, scalar_prefetch = 0 : i64, scratch_operands = 0 : i64, tpu.core_type = #tpu.core_type<tc>, window_params = [{transform_indices = @transform_0, window_bounds = array<i64: 8, 256>}, {transform_indices = @transform_1, window_bounds = array<i64: 8, 1>}, {transform_indices = @transform_2, window_bounds = array<i64: 8, 1>}, {transform_indices = @transform_3, window_bounds = array<i64: 8, 256>}]} {
    %c0 = arith.constant 0 : index
    %c0_0 = arith.constant 0 : index
    %0 = vector.load %arg2[%c0, %c0_0] : memref<8x256xf32, #tpu.memory_space<vmem>>, vector<8x256xf32>
    %c0_1 = arith.constant 0 : index
    %c0_2 = arith.constant 0 : index
    %1 = vector.load %arg3[%c0_1, %c0_2] : memref<8x1xf32, #tpu.memory_space<vmem>>, vector<8x1xf32>
    %2 = vector.broadcast %1 : vector<8x1xf32> to vector<8x256xf32>
    %3 = arith.mulf %0, %2 : vector<8x256xf32>
    %c0_3 = arith.constant 0 : index
    %c0_4 = arith.constant 0 : index
    %4 = vector.load %arg4[%c0_3, %c0_4] : memref<8x1xf32, #tpu.memory_space<vmem>>, vector<8x1xf32>
    %5 = vector.broadcast %4 : vector<8x1xf32> to vector<8x256xf32>
    %6 = arith.addf %3, %5 : vector<8x256xf32>
    %c0_5 = arith.constant 0 : index
    %c0_6 = arith.constant 0 : index
    %7 = vector.load %arg5[%c0_5, %c0_6] : memref<8x256xf32, #tpu.memory_space<vmem>>, vector<8x256xf32>
    tpu.vector_store %arg5[%c0_5, %c0_6], %6 {strides = array<i32>} : memref<8x256xf32, #tpu.memory_space<vmem>>, vector<8x256xf32>,
    return
  }
  func.func @transform_0(%arg0: i32, %arg1: i32) -> (i32, i32) {
    %c0_i32 = arith.constant 0 : i32
    return %arg0, %arg1 : i32, i32
  }
  func.func @transform_1(%arg0: i32, %arg1: i32) -> (i32, i32) {
    %c0_i32 = arith.constant 0 : i32
    %c0_i32_0 = arith.constant 0 : i32
    return %arg0, %c0_i32 : i32, i32
  }
  func.func @transform_2(%arg0: i32, %arg1: i32) -> (i32, i32) {
    %c0_i32 = arith.constant 0 : i32
    %c0_i32_0 = arith.constant 0 : i32
    return %arg0, %c0_i32 : i32, i32
  }
  func.func @transform_3(%arg0: i32, %arg1: i32) -> (i32, i32) {
    %c0_i32 = arith.constant 0 : i32
    return %arg0, %arg1 : i32, i32
  }
}

</mosaic_0001>

<bundles_post_ra>
// kernel: tpu_custom_call.1
= control target key start
LH: loop header
LB: loop body
LE: loop exit
PB: predicated region body
PF: predicated region fallthrough
CT: control target
= control target key end

     0   :  { %v74_v1 = vmov 0   ;;  %s111_s0 = inlined_call_operand.vmem [shape: f32[8,256], index: 0, kind: input, shape index: {}]   ;;  %s112_s1 = inlined_call_operand.vmem [shape: f32[8,1], index: 1, kind: input, shape index: {}]   ;;  %s113_s2 = inlined_call_operand.vmem [shape: f32[8,1], index: 2, kind: input, shape index: {}]   ;;  %s114_s3 = inlined_call_operand.hbm [shape: f32[8,256], index: 3, kind: output, shape index: {}]  }
   0x1   :  { %v17_v0 = vld [vmem:[%s112_s1] sm:$0xff]  ;;  %51 = vset.pattern.permute.xlu0 %v74_v1 }
   0x2   :  { %8 = vsyncpa [#allocation3], 0  ;;  %20 = vperm.xlu0 %51, %v17_v0   ;;  %v25_v2 = vld [vmem:[%s113_s2] sm:$0xff]  ;;  %v16_v5 = vld [vmem:[%s111_s0 + $0x8] sm:$0xff]  ;;  %s75_s20 = smov [#allocation2]  }
   0x3   :  { %v15_v4 = vld [vmem:[%s111_s0] sm:$0xff]  ;;  %s41_s1 = sshll.u32 %s75_s20, 4  ;;  %s42_s1 = int_to_ptr.vmem [resolvable:$true] %s41_s1 }
   0x4   :  { %s52_s2 = scalar_lea.vmem %s42_s1, 256  ;;  %p57_p1 = scmp.lt.s32.totalorder %s42_s1, %s42_s1 }
   0x5   :  { %p53_p0 = scmp.ne.s32.totalorder %s42_s1, %s52_s2  ;;  %p58_p2 = scmp.lt.s32.totalorder %s52_s2, %s52_s2 }
   0x6   :  { %28 = vperm.xlu0 %51, %v25_v2  }
   0x7   :  { %p59_p3 = por %p58_p2, %p57_p1 }
   0x9   :  { %p60_p4 = pnand %p59_p3, %p53_p0 }
  0x7d   :  { %v21_v3 = vpop.permute.xlu0 %20 }
  0x7e   :  { %v23_v6 = vmul.f32 %v21_v3, %v15_v4  ;;  %v24_v7 = vmul.f32 %v21_v3, %v16_v5 }
  0x81   :  { %v29_v8 = vpop.permute.xlu0 %28 }
  0x82   :  { %v31_v9 = vadd.f32 %v29_v8, %v23_v6  ;;  %v32_v10 = vadd.f32 %v29_v8, %v24_v7 }
  0x84   :  { %33 = vst [vmem:[#allocation2] sm:$0xff] %v31_v9  ;;  %34 = vst [vmem:[#allocation2 + $0x8] sm:$0xff] %v32_v10 }
  0x85   :  { %63 = shalt.err (!%p60_p4)
}
  0x86   :  { %44 = dma.vmem_to_hbm [thread:$0]  %s42_s1, 256, %s114_s3, [#allocation3]  }
  0x87   :  { %72 = dma.done.wait [#allocation3], 256  }
  0x88   :  { %73 = vsyncadd [#allocation3], 4294967040 }
  0x89   :  { %48 = vsyncpa [#allocation3], 1 }

</bundles_post_ra>
